<compile_context>
chip_gen: v5e
topology: v5e:2x2
jax: 0.10.0
libtpu: 0.0.40
codegen_flags: <defaults>
</compile_context>

<pallas_src>
import jax
import jax.numpy as jnp
from jax import lax
from jax.experimental import pallas as pl
from jax.experimental.pallas import tpu as pltpu


def _round_up(n, m):
    return -(-n // m) * m


def _bias_offsets(E2, H2, O2):
    """Lane-aligned (multiple-of-128) offsets of [b_vo | b1 | b2] in the packed bias."""
    off1 = _round_up(E2, 128)
    off2 = off1 + _round_up(H2, 128)
    return off1, off2


def _vmem_budget():
    """Generation-aware (cap on samples per grid step, scoped-VMEM limit)."""
    try:
        info = pltpu.get_tpu_info()
        vmem_phys = getattr(info, "vmem_capacity_bytes", 64 * 1024 * 1024)
    except Exception:  # no TPU info available -> conservative (v7x-safe) budget
        vmem_phys = 64 * 1024 * 1024
    if vmem_phys >= 100 * 1024 * 1024:
        # v5e / v6e: 128 MiB VMEM per core.  (On v5e tiles >4k samples buy little at
        # its lower HBM bandwidth, but they cost nothing with this much VMEM.)
        return 8192, 64 * 1024 * 1024
    # v7x: 64 MiB VMEM per core -> smaller tiles and limit with headroom.
    return 4096, 48 * 1024 * 1024


def _fusion_kernel(img_ref, tab_ref, wvo_i_ref, wvo_t_ref, w1_ref, w2_ref,
                   bias_ref, out_ref):
    """One batch tile of FeatureFusion in the 'paired-sample' layout.

    Every VMEM row holds TWO consecutive batch samples side by side
    (lanes [0,W) = sample 2i, lanes [W,2W) = sample 2i+1); all weights are 2x
    block-diagonal so each matmul handles both samples independently.

    img_ref   : (TBP, 2*IMG_F)   paired image features (f32 or bf16, streamed)
    tab_ref   : (TBP, 2*TAB_F)   paired tabular features
    wvo_i_ref : (2*IMG_F, 2*E)   block-diag fused V->out attention weight (img rows)
    wvo_t_ref : (2*TAB_F, 2*E)   block-diag fused V->out attention weight (tab rows)
    w1_ref    : (2*E, 2*H)       block-diag FFN Linear1 weight (LayerNorm gamma folded)
    w2_ref    : (2*H, 2*O)       block-diag FFN Linear2 weight
    bias_ref  : (1, P)           packed f32 paired biases [b_vo,b_vo | b1,b1 | b2,b2]
    out_ref   : (TBP, 2*O)       paired output; 2*O = 128 -> lane-dense stores
    """
    E2, H2 = w1_ref.shape
    O2 = w2_ref.shape[1]
    E = E2 // 2                       # per-sample embed width (LayerNorm width)
    off1, off2 = _bias_offsets(E2, H2, O2)
    cd = w1_ref.dtype                 # MXU operand dtype (bf16 on the perf path)

    # ---- fused MHA (seq_len==1 => softmax==1 => out_proj(v_proj(x))), no concat ----
    y = (jnp.dot(img_ref[...].astype(cd), wvo_i_ref[...],
                 preferred_element_type=jnp.float32)
         + jnp.dot(tab_ref[...].astype(cd), wvo_t_ref[...],
                   preferred_element_type=jnp.float32)
         + bias_ref[:, 0:E2])

    # ---- per-sample LayerNorm (f32 stats, eps = PyTorch default 1e-5) ----
    # Each row holds two samples: lanes [0,E) and [E,2E) get independent statistics.
    lane = lax.broadcasted_iota(jnp.int32, y.shape, 1)
    left = lane < E
    inv_e = 1.0 / E
    m0 = jnp.sum(jnp.where(left, y, 0.0), axis=-1, keepdims=True) * inv_e
    m1 = jnp.sum(jnp.where(left, 0.0, y), axis=-1, keepdims=True) * inv_e
    c = y - jnp.where(left, m0, m1)
    c2 = c * c
    v0 = jnp.sum(jnp.where(left, c2, 0.0), axis=-1, keepdims=True) * inv_e
    v1 = jnp.sum(jnp.where(left, 0.0, c2), axis=-1, keepdims=True) * inv_e
    norm = c * lax.rsqrt(jnp.where(left, v0, v1) + 1e-5)

    # ---- Linear -> ReLU -> (Dropout = identity at inference) -> Linear ----
    h = jnp.dot(norm.astype(cd), w1_ref[...],
                preferred_element_type=jnp.float32) + bias_ref[:, off1:off1 + H2]
    h = jnp.maximum(h, 0.0)
    out = jnp.dot(h.astype(cd), w2_ref[...],
                  preferred_element_type=jnp.float32) + bias_ref[:, off2:off2 + O2]

    out_ref[...] = out.astype(out_ref.dtype)


def feature_fusion_forward(img_feat, tab_feat, packed, *, tile_b=None,
                           out_dtype=jnp.float32):
    """Batch-tiled Pallas call.

    tile_b    : samples per grid step (defaults to a generation-aware maximum).
    out_dtype : output HBM dtype; pass jnp.bfloat16 if the consumer tolerates it
                (halves the dominant output stream on this memory-bound kernel).
    """
    B, IMG_F = img_feat.shape
    TAB_F = tab_feat.shape[1]
    E2, H2 = packed["w1"].shape
    O2 = packed["w2"].shape[1]
    assert 2 * (IMG_F + TAB_F) == E2, "packed params don't match feature widths"

    cap_samples, vmem_limit = _vmem_budget()
    B_pair = pl.cdiv(B, 2)            # paired rows (2 samples per row)

    if tile_b is None:
        cap_rows = cap_samples // 2
        if B_pair <= cap_rows:
            tbp = B_pair              # single block == full (paired) batch
        else:
            # Keep >= ~8 grid steps so megacore sharding + double buffering engage.
            tbp = min(cap_rows, _round_up(pl.cdiv(B_pair, 8), 8))
            tbp = max(8, (tbp // 8) * 8)
    else:
        tbp = max(1, tile_b // 2)
        tbp = B_pair if tbp >= B_pair else max(8, (tbp // 8) * 8)

    grid_b = pl.cdiv(B_pair, tbp)
    rows_total = grid_b * tbp
    B_total = 2 * rows_total
    if B_total != B:
        # Rare slow path (odd B or tile not dividing the batch): one padded copy.
        # Batches aligned to the pairing / tile granularity never hit this.
        pad = B_total - B
        img_feat = jnp.pad(img_feat, ((0, pad), (0, 0)))
        tab_feat = jnp.pad(tab_feat, ((0, pad), (0, 0)))

    # Sample pairing via FREE row-major reshapes (bit-identical views, no HBM pass).
    img2 = img_feat.reshape(rows_total, 2 * IMG_F)
    tab2 = tab_feat.reshape(rows_total, 2 * TAB_F)

    full = lambda i: (0, 0)           # parameters broadcast to every batch tile
    grid_spec = pltpu.PrefetchScalarGridSpec(
        num_scalar_prefetch=0,
        grid=(grid_b,),
        in_specs=[
            pl.BlockSpec((tbp, 2 * IMG_F), lambda i: (i, 0)),   # paired img features
            pl.BlockSpec((tbp, 2 * TAB_F), lambda i: (i, 0)),   # paired tab features
            pl.BlockSpec(packed["wvo_img"].shape, full),        # W_vo (img rows, paired)
            pl.BlockSpec(packed["wvo_tab"].shape, full),        # W_vo (tab rows, paired)
            pl.BlockSpec(packed["w1"].shape, full),             # W1' (LN folded, paired)
            pl.BlockSpec(packed["w2"].shape, full),             # W2 (paired)
            pl.BlockSpec(packed["bias"].shape, full),           # packed biases (f32)
        ],
        out_specs=pl.BlockSpec((tbp, O2), lambda i: (i, 0)),    # 128-lane dense output
    )

    out2 = pl.pallas_call(
        _fusion_kernel,
        out_shape=jax.ShapeDtypeStruct((rows_total, O2), out_dtype),
        grid_spec=grid_spec,
        compiler_params=pltpu.CompilerParams(
            dimension_semantics=("parallel",),      # megacore-shardable batch axis
            vmem_limit_bytes=vmem_limit,            # generation-aware, with headroom
        ),
    )(img2, tab2, packed["wvo_img"], packed["wvo_tab"],
      packed["w1"], packed["w2"], packed["bias"])

    out = out2.reshape(B_total, O2 // 2)            # free row-major un-pairing
    return out if B_total == B else out[:B]


def init_raw_params(key, img_features, tab_features, hidden_dim=128, out_dim=64):
    """Deterministic synthetic parameters in PyTorch (out, in) orientation."""
    E = img_features + tab_features
    ks = jax.random.split(key, 10)
    s = 0.05
    n = jax.random.normal
    return {
        # NOTE: with real PyTorch weights, wv/bv are the V slice of
        # in_proj_weight/bias, i.e. rows [2E:3E]; a loader must pick that slice.
        "wv": s * n(ks[0], (E, E), jnp.float32),
        "bv": s * n(ks[1], (E,), jnp.float32),
        "wo": s * n(ks[2], (E, E), jnp.float32),
        "bo": s * n(ks[3], (E,), jnp.float32),
        "gamma": 1.0 + 0.1 * n(ks[4], (E,), jnp.float32),
        "beta": 0.1 * n(ks[5], (E,), jnp.float32),
        "w1": s * n(ks[6], (hidden_dim, E), jnp.float32),
        "b1": s * n(ks[7], (hidden_dim,), jnp.float32),
        "w2": s * n(ks[8], (out_dim, hidden_dim), jnp.float32),
        "b2": s * n(ks[9], (out_dim,), jnp.float32),
    }


def pack_params(raw, img_features, compute_dtype=jnp.bfloat16):
    """Offline algebraic fusion + 2x block-diagonal 'pairing' + dtype packing.

    All fusion is done in f32; weights are cast once at the end.  Note: on the bf16
    path the folded LayerNorm affine is quantized to bf16 together with W1 (same
    error class as casting W1 alone); the f32 path is exact.
    """
    wv_t = raw["wv"].T                       # (E, E)
    wo_t = raw["wo"].T                       # (E, E)
    w_vo = wv_t @ wo_t                       # fused attention: out_proj(v_proj(x))
    b_vo = raw["bv"] @ wo_t + raw["bo"]      # (E,)

    w1_t = raw["w1"].T                       # (E, H)
    w1_f = raw["gamma"][:, None] * w1_t      # fold LayerNorm gamma
    b1_f = raw["beta"] @ w1_t + raw["b1"]    # fold LayerNorm beta
    w2_t = raw["w2"].T                       # (H, O)

    E, H = w1_t.shape
    O = w2_t.shape[1]

    def paired(w):
        # Block-diagonal 2x replication: [a | b] @ paired(W) == [a@W | b@W].
        return jnp.kron(jnp.eye(2, dtype=w.dtype), w)

    E2, H2, O2 = 2 * E, 2 * H, 2 * O
    off1, off2 = _bias_offsets(E2, H2, O2)
    bias = jnp.zeros((1, off2 + _round_up(O2, 128)), jnp.float32)
    bias = bias.at[0, 0:E2].set(jnp.concatenate([b_vo, b_vo]))
    bias = bias.at[0, off1:off1 + H2].set(jnp.concatenate([b1_f, b1_f]))
    bias = bias.at[0, off2:off2 + O2].set(jnp.concatenate([raw["b2"], raw["b2"]]))

    return {
        "wvo_img": paired(w_vo[:img_features]).astype(compute_dtype),
        "wvo_tab": paired(w_vo[img_features:]).astype(compute_dtype),
        "w1": paired(w1_f).astype(compute_dtype),
        "w2": paired(w2_t).astype(compute_dtype),
        "bias": bias,                        # biases kept f32
    }


def reference_forward(img_feat, tab_feat, raw):
    """Pure-JAX f32 reference with the original (un-fused) PyTorch semantics."""
    x = jnp.concatenate([img_feat, tab_feat], axis=1)
    v = x @ raw["wv"].T + raw["bv"]
    y = v @ raw["wo"].T + raw["bo"]
    mean = jnp.mean(y, axis=-1, keepdims=True)
    var = jnp.mean((y - mean) ** 2, axis=-1, keepdims=True)
    ln = (y - mean) / jnp.sqrt(var + 1e-5) * raw["gamma"] + raw["beta"]
    h = jnp.maximum(ln @ raw["w1"].T + raw["b1"], 0.0)
    return h @ raw["w2"].T + raw["b2"]


def reference_forward_matched(img_feat, tab_feat, p):
    """Pure-JAX reference mirroring the kernel's numeric recipe (fused weights,
    compute-dtype dot operands, f32 accumulation).  Uses the un-paired sub-blocks
    of the packed block-diagonal weights."""
    cd = p["wvo_img"].dtype
    E2, H2 = p["w1"].shape
    O2 = p["w2"].shape[1]
    E, H, O = E2 // 2, H2 // 2, O2 // 2
    IMG_F = p["wvo_img"].shape[0] // 2
    TAB_F = p["wvo_tab"].shape[0] // 2
    off1, off2 = _bias_offsets(E2, H2, O2)
    wvo_i = p["wvo_img"][:IMG_F, :E]
    wvo_t = p["wvo_tab"][:TAB_F, :E]
    w1 = p["w1"][:E, :H]
    w2 = p["w2"][:H, :O]
    b_vo = p["bias"][0, 0:E]
    b1 = p["bias"][0, off1:off1 + H]
    b2 = p["bias"][0, off2:off2 + O]
    y = (jnp.dot(img_feat.astype(cd), wvo_i, preferred_element_type=jnp.float32)
         + jnp.dot(tab_feat.astype(cd), wvo_t, preferred_element_type=jnp.float32)
         + b_vo)
    mean = jnp.mean(y, axis=-1, keepdims=True)
    c = y - mean
    var = jnp.mean(c * c, axis=-1, keepdims=True)
    norm = c * lax.rsqrt(var + 1e-5)
    h = jnp.dot(norm.astype(cd), w1, preferred_element_type=jnp.float32) + b1
    h = jnp.maximum(h, 0.0)
    return jnp.dot(h.astype(cd), w2, preferred_element_type=jnp.float32) + b2


if __name__ == "__main__":
    # Small shapes consistent with the module: img=24, tab=8 -> E=32 (divisible by
    # attention_heads=4), hidden_dim=128, out_dim=64, depth=0.
    B, IMG_F, TAB_F = 16, 24, 8
    HIDDEN, OUT = 128, 64

    key = jax.random.PRNGKey(0)
    k_img, k_tab, k_param, k_big = jax.random.split(key, 4)
    img_feat = jax.random.normal(k_img, (B, IMG_F), jnp.float32)
    tab_feat = jax.random.normal(k_tab, (B, TAB_F), jnp.float32)
    raw = init_raw_params(k_param, IMG_F, TAB_F, HIDDEN, OUT)
    ref = reference_forward(img_feat, tab_feat, raw)

    # 1) Exact-semantics check: f32 compute path vs un-fused PyTorch-style reference.
    p32 = pack_params(raw, IMG_F, compute_dtype=jnp.float32)
    out32 = jax.block_until_ready(feature_fusion_forward(img_feat, tab_feat, p32))
    assert out32.shape == (B, OUT)
    assert jnp.allclose(out32, ref, atol=1e-4, rtol=1e-4), "f32 path mismatch"

    # 2) Perf path: bf16 MXU operands, f32 accumulation + f32 LN/ReLU/bias, f32 output.
    pbf = pack_params(raw, IMG_F, compute_dtype=jnp.bfloat16)
    outbf = jax.block_until_ready(feature_fusion_forward(img_feat, tab_feat, pbf))
    refm = reference_forward_matched(img_feat, tab_feat, pbf)
    assert jnp.allclose(outbf, refm, atol=2e-3, rtol=2e-3), "bf16 path mismatch"
    assert jnp.allclose(outbf, ref, atol=5e-2, rtol=5e-2), "bf16 path drifted from f32"

    # 3) bf16 output stream (downstream consumer tolerates bf16): halves output HBM bytes.
    outbb = jax.block_until_ready(
        feature_fusion_forward(img_feat, tab_feat, pbf, out_dtype=jnp.bfloat16))
    assert outbb.dtype == jnp.bfloat16
    assert jnp.allclose(outbb.astype(jnp.float32), refm, atol=1e-2, rtol=1e-2), \
        "bf16-output path mismatch"

    # 4) bf16 activations in (producer emits bf16) + multi-step grid path (B=64, tile_b=16),
    #    exercising the pipelined / megacore-parallel batch axis with no padding.
    B2 = 64
    img_big = jax.random.normal(k_big, (B2, IMG_F), jnp.float32).astype(jnp.bfloat16)
    tab_big = jax.random.normal(jax.random.fold_in(k_big, 1),
                                (B2, TAB_F), jnp.float32).astype(jnp.bfloat16)
    out_grid = jax.block_until_ready(
        feature_fusion_forward(img_big, tab_big, pbf, tile_b=16))
    refm2 = reference_forward_matched(img_big, tab_big, pbf)
    assert out_grid.shape == (B2, OUT)
    assert jnp.allclose(out_grid, refm2, atol=2e-3, rtol=2e-3), "multi-step grid mismatch"

    # TODO(synk): dropout is identity (inference only); MHA Q/K projections, softmax and
    # attention-weight outputs are mathematically dead for the module's seq_len==1 path
    # and are folded offline rather than emitted.
    print("KERNEL_OK")
</pallas_src>

<mosaic_0001>
module attributes {stable_mosaic.version = 11 : i64} {
  func.func @_fusion_kernel(%arg0: i32, %arg1: memref<8x48xf32, #tpu.memory_space<vmem>>, %arg2: memref<8x16xf32, #tpu.memory_space<vmem>>, %arg3: memref<48x64xf32, #tpu.memory_space<vmem>>, %arg4: memref<16x64xf32, #tpu.memory_space<vmem>>, %arg5: memref<64x256xf32, #tpu.memory_space<vmem>>, %arg6: memref<256x128xf32, #tpu.memory_space<vmem>>, %arg7: memref<1x512xf32, #tpu.memory_space<vmem>>, %arg8: memref<8x128xf32, #tpu.memory_space<vmem>>) attributes {dimension_semantics = [#tpu.dimension_semantics<parallel>], iteration_bounds = array<i64: 1>, scalar_prefetch = 0 : i64, scratch_operands = 0 : i64, tpu.core_type = #tpu.core_type<tc>, window_params = [{transform_indices = @transform_0, window_bounds = array<i64: 8, 48>}, {transform_indices = @transform_1, window_bounds = array<i64: 8, 16>}, {pipeline_mode = #tpu.pipeline_mode<synchronous>, transform_indices = @transform_2, window_bounds = array<i64: 48, 64>}, {pipeline_mode = #tpu.pipeline_mode<synchronous>, transform_indices = @transform_3, window_bounds = array<i64: 16, 64>}, {pipeline_mode = #tpu.pipeline_mode<synchronous>, transform_indices = @transform_4, window_bounds = array<i64: 64, 256>}, {pipeline_mode = #tpu.pipeline_mode<synchronous>, transform_indices = @transform_5, window_bounds = array<i64: 256, 128>}, {pipeline_mode = #tpu.pipeline_mode<synchronous>, transform_indices = @transform_6, window_bounds = array<i64: 1, 512>}, {transform_indices = @transform_7, window_bounds = array<i64: 8, 128>}]} {
    %c0 = arith.constant 0 : index
    %c0_0 = arith.constant 0 : index
    %0 = vector.load %arg1[%c0, %c0_0] : memref<8x48xf32, #tpu.memory_space<vmem>>, vector<8x48xf32>
    %c0_1 = arith.constant 0 : index
    %c0_2 = arith.constant 0 : index
    %1 = vector.load %arg3[%c0_1, %c0_2] : memref<48x64xf32, #tpu.memory_space<vmem>>, vector<48x64xf32>
    %cst = arith.constant dense<0.000000e+00> : vector<8x64xf32>
    %2 = tpu.matmul %0, %1, %cst {dimension_numbers = #tpu.dot_dimension_numbers<[1], [0], [0], [1], [0, 0, 1, 1], [], []>} : vector<8x48xf32>, vector<48x64xf32>, vector<8x64xf32> -> vector<8x64xf32>
    %c0_3 = arith.constant 0 : index
    %c0_4 = arith.constant 0 : index
    %3 = vector.load %arg2[%c0_3, %c0_4] : memref<8x16xf32, #tpu.memory_space<vmem>>, vector<8x16xf32>
    %c0_5 = arith.constant 0 : index
    %c0_6 = arith.constant 0 : index
    %4 = vector.load %arg4[%c0_5, %c0_6] : memref<16x64xf32, #tpu.memory_space<vmem>>, vector<16x64xf32>
    %cst_7 = arith.constant dense<0.000000e+00> : vector<8x64xf32>
    %5 = tpu.matmul %3, %4, %cst_7 {dimension_numbers = #tpu.dot_dimension_numbers<[1], [0], [0], [1], [0, 0, 1, 1], [], []>} : vector<8x16xf32>, vector<16x64xf32>, vector<8x64xf32> -> vector<8x64xf32>
    %6 = arith.addf %2, %5 : vector<8x64xf32>
    %c0_8 = arith.constant 0 : index
    %c0_9 = arith.constant 0 : index
    %7 = vector.load %arg7[%c0_8, %c0_9] : memref<1x512xf32, #tpu.memory_space<vmem>>, vector<1x64xf32>
    %8 = vector.broadcast %7 : vector<1x64xf32> to vector<8x64xf32>
    %9 = arith.addf %6, %8 : vector<8x64xf32>
    %10 = tpu.iota {dimensions = array<i32: 1>} : vector<8x64xi32>
    %c32_i32 = arith.constant 32 : i32
    %11 = vector.broadcast %c32_i32 : i32 to vector<8x64xi32>
    %12 = arith.cmpi slt, %10, %11 : vector<8x64xi32>
    %cst_10 = arith.constant 0.000000e+00 : f32
    %13 = vector.broadcast %cst_10 : f32 to vector<8x64xf32>
    %14 = arith.select %12, %9, %13 : vector<8x64xi1>, vector<8x64xf32>
    %cst_11 = arith.constant dense<0.000000e+00> : vector<8xf32>
    %15 = vector.multi_reduction <add>, %14, %cst_11 [1] : vector<8x64xf32> to vector<8xf32>
    %16 = vector.shape_cast %15 : vector<8xf32> to vector<8x1xf32>
    %cst_12 = arith.constant 3.125000e-02 : f32
    %17 = vector.broadcast %cst_12 : f32 to vector<8x1xf32>
    %18 = arith.mulf %16, %17 : vector<8x1xf32>
    %cst_13 = arith.constant 0.000000e+00 : f32
    %19 = vector.broadcast %cst_13 : f32 to vector<8x64xf32>
    %20 = arith.select %12, %19, %9 : vector<8x64xi1>, vector<8x64xf32>
    %cst_14 = arith.constant dense<0.000000e+00> : vector<8xf32>
    %21 = vector.multi_reduction <add>, %20, %cst_14 [1] : vector<8x64xf32> to vector<8xf32>
    %22 = vector.shape_cast %21 : vector<8xf32> to vector<8x1xf32>
    %cst_15 = arith.constant 3.125000e-02 : f32
    %23 = vector.broadcast %cst_15 : f32 to vector<8x1xf32>
    %24 = arith.mulf %22, %23 : vector<8x1xf32>
    %25 = vector.shape_cast %18 : vector<8x1xf32> to vector<8x1xf32>
    %26 = vector.broadcast %25 : vector<8x1xf32> to vector<8x64xf32>
    %27 = vector.shape_cast %24 : vector<8x1xf32> to vector<8x1xf32>
    %28 = vector.broadcast %27 : vector<8x1xf32> to vector<8x64xf32>
    %29 = arith.select %12, %26, %28 : vector<8x64xi1>, vector<8x64xf32>
    %30 = arith.subf %9, %29 : vector<8x64xf32>
    %31 = arith.mulf %30, %30 : vector<8x64xf32>
    %cst_16 = arith.constant 0.000000e+00 : f32
    %32 = vector.broadcast %cst_16 : f32 to vector<8x64xf32>
    %33 = arith.select %12, %31, %32 : vector<8x64xi1>, vector<8x64xf32>
    %cst_17 = arith.constant dense<0.000000e+00> : vector<8xf32>
    %34 = vector.multi_reduction <add>, %33, %cst_17 [1] : vector<8x64xf32> to vector<8xf32>
    %35 = vector.shape_cast %34 : vector<8xf32> to vector<8x1xf32>
    %cst_18 = arith.constant 3.125000e-02 : f32
    %36 = vector.broadcast %cst_18 : f32 to vector<8x1xf32>
    %37 = arith.mulf %35, %36 : vector<8x1xf32>
    %cst_19 = arith.constant 0.000000e+00 : f32
    %38 = vector.broadcast %cst_19 : f32 to vector<8x64xf32>
    %39 = arith.select %12, %38, %31 : vector<8x64xi1>, vector<8x64xf32>
    %cst_20 = arith.constant dense<0.000000e+00> : vector<8xf32>
    %40 = vector.multi_reduction <add>, %39, %cst_20 [1] : vector<8x64xf32> to vector<8xf32>
    %41 = vector.shape_cast %40 : vector<8xf32> to vector<8x1xf32>
    %cst_21 = arith.constant 3.125000e-02 : f32
    %42 = vector.broadcast %cst_21 : f32 to vector<8x1xf32>
    %43 = arith.mulf %41, %42 : vector<8x1xf32>
    %44 = vector.shape_cast %37 : vector<8x1xf32> to vector<8x1xf32>
    %45 = vector.broadcast %44 : vector<8x1xf32> to vector<8x64xf32>
    %46 = vector.shape_cast %43 : vector<8x1xf32> to vector<8x1xf32>
    %47 = vector.broadcast %46 : vector<8x1xf32> to vector<8x64xf32>
    %48 = arith.select %12, %45, %47 : vector<8x64xi1>, vector<8x64xf32>
    %cst_22 = arith.constant 9.99999974E-6 : f32
    %49 = vector.broadcast %cst_22 : f32 to vector<8x64xf32>
    %50 = arith.addf %48, %49 : vector<8x64xf32>
    %51 = math.rsqrt %50 : vector<8x64xf32>
    %52 = arith.mulf %30, %51 : vector<8x64xf32>
    %c0_23 = arith.constant 0 : index
    %c0_24 = arith.constant 0 : index
    %53 = vector.load %arg5[%c0_23, %c0_24] : memref<64x256xf32, #tpu.memory_space<vmem>>, vector<64x256xf32>
    %cst_25 = arith.constant dense<0.000000e+00> : vector<8x256xf32>
    %54 = tpu.matmul %52, %53, %cst_25 {dimension_numbers = #tpu.dot_dimension_numbers<[1], [0], [0], [1], [0, 0, 1, 1], [], []>} : vector<8x64xf32>, vector<64x256xf32>, vector<8x256xf32> -> vector<8x256xf32>
    %c0_26 = arith.constant 0 : index
    %c128 = arith.constant 128 : index
    %55 = vector.load %arg7[%c0_26, %c128] : memref<1x512xf32, #tpu.memory_space<vmem>>, vector<1x256xf32>
    %56 = vector.broadcast %55 : vector<1x256xf32> to vector<8x256xf32>
    %57 = arith.addf %54, %56 : vector<8x256xf32>
    %cst_27 = arith.constant 0.000000e+00 : f32
    %58 = vector.broadcast %cst_27 : f32 to vector<8x256xf32>
    %59 = arith.maximumf %57, %58 : vector<8x256xf32>
    %c0_28 = arith.constant 0 : index
    %c0_29 = arith.constant 0 : index
    %60 = vector.load %arg6[%c0_28, %c0_29] : memref<256x128xf32, #tpu.memory_space<vmem>>, vector<256x128xf32>
    %cst_30 = arith.constant dense<0.000000e+00> : vector<8x128xf32>
    %61 = tpu.matmul %59, %60, %cst_30 {dimension_numbers = #tpu.dot_dimension_numbers<[1], [0], [0], [1], [0, 0, 1, 1], [], []>} : vector<8x256xf32>, vector<256x128xf32>, vector<8x128xf32> -> vector<8x128xf32>
    %c0_31 = arith.constant 0 : index
    %c384 = arith.constant 384 : index
    %62 = vector.load %arg7[%c0_31, %c384] : memref<1x512xf32, #tpu.memory_space<vmem>>, vector<1x128xf32>
    %63 = vector.broadcast %62 : vector<1x128xf32> to vector<8x128xf32>
    %64 = arith.addf %61, %63 : vector<8x128xf32>
    %c0_32 = arith.constant 0 : index
    %c0_33 = arith.constant 0 : index
    %65 = vector.load %arg8[%c0_32, %c0_33] : memref<8x128xf32, #tpu.memory_space<vmem>>, vector<8x128xf32>
    tpu.vector_store %arg8[%c0_32, %c0_33], %64 {strides = array<i32>} : memref<8x128xf32, #tpu.memory_space<vmem>>, vector<8x128xf32>,
    return
  }
  func.func @transform_0(%arg0: i32) -> (i32, i32) {
    %c0_i32 = arith.constant 0 : i32
    %c0_i32_0 = arith.constant 0 : i32
    return %arg0, %c0_i32 : i32, i32
  }
  func.func @transform_1(%arg0: i32) -> (i32, i32) {
    %c0_i32 = arith.constant 0 : i32
    %c0_i32_0 = arith.constant 0 : i32
    return %arg0, %c0_i32 : i32, i32
  }
  func.func @transform_2(%arg0: i32) -> (i32, i32) {
    %c0_i32 = arith.constant 0 : i32
    %c0_i32_0 = arith.constant 0 : i32
    %c0_i32_1 = arith.constant 0 : i32
    return %c0_i32, %c0_i32_0 : i32, i32
  }
  func.func @transform_3(%arg0: i32) -> (i32, i32) {
    %c0_i32 = arith.constant 0 : i32
    %c0_i32_0 = arith.constant 0 : i32
    %c0_i32_1 = arith.constant 0 : i32
    return %c0_i32, %c0_i32_0 : i32, i32
  }
  func.func @transform_4(%arg0: i32) -> (i32, i32) {
    %c0_i32 = arith.constant 0 : i32
    %c0_i32_0 = arith.constant 0 : i32
    %c0_i32_1 = arith.constant 0 : i32
    return %c0_i32, %c0_i32_0 : i32, i32
  }
  func.func @transform_5(%arg0: i32) -> (i32, i32) {
    %c0_i32 = arith.constant 0 : i32
    %c0_i32_0 = arith.constant 0 : i32
    %c0_i32_1 = arith.constant 0 : i32
    return %c0_i32, %c0_i32_0 : i32, i32
  }
  func.func @transform_6(%arg0: i32) -> (i32, i32) {
    %c0_i32 = arith.constant 0 : i32
    %c0_i32_0 = arith.constant 0 : i32
    %c0_i32_1 = arith.constant 0 : i32
    return %c0_i32, %c0_i32_0 : i32, i32
  }
  func.func @transform_7(%arg0: i32) -> (i32, i32) {
    %c0_i32 = arith.constant 0 : i32
    %c0_i32_0 = arith.constant 0 : i32
    return %arg0, %c0_i32 : i32, i32
  }
}

</mosaic_0001>

<bundles_post_ra>
// kernel: tpu_custom_call.1
= control target key start
LH: loop header
LB: loop body
LE: loop exit
PB: predicated region body
PF: predicated region fallthrough
CT: control target
= control target key end

     0   :  { %12 = vsyncpa [#allocation3], 0  ;;  %s688_s0 = inlined_call_operand.hbm [shape: f32[8,48], index: 0, kind: input, shape index: {}]   ;;  %s689_s1 = inlined_call_operand.hbm [shape: f32[8,16], index: 1, kind: input, shape index: {}]   ;;  %s690_s2 = inlined_call_operand.hbm [shape: f32[48,64], index: 2, kind: input, shape index: {}]   ;;  %s691_s3 = inlined_call_operand.hbm [shape: f32[16,64], index: 3, kind: input, shape index: {}]   ;;  %s692_s4 = inlined_call_operand.hbm [shape: f32[64,256], index: 4, kind: input, shape index: {}]   ;;  %s693_s5 = inlined_call_operand.hbm [shape: f32[256,128], index: 5, kind: input, shape index: {}]   ;;  %s694_s6 = inlined_call_operand.vmem [shape: f32[1,512], index: 6, kind: input, shape index: {}]   ;;  %s695_s7 = inlined_call_operand.hbm [shape: f32[8,128], index: 7, kind: output, shape index: {}]  }
   0x1   :  { %13 = vsyncpa [#allocation6], 0 }
   0x2   :  { %14 = vsyncpa [#allocation9], 0 }
   0x3   :  { %15 = vsyncpa [#allocation12], 0  ;;  %s33_s26 = sshll.u32 %s689_s1, 4  ;;  %s34_s26 = int_to_ptr.hbm [resolvable:$true] %s33_s26 }
   0x4   :  { %16 = vsyncpa [#allocation4], 0  ;;  %s581_s27 = smov [#allocation5]   ;;  %s56_s8 = sshll.u32 %s691_s3, 4  ;;  %s57_s8 = int_to_ptr.hbm [resolvable:$true] %s56_s8 }
   0x5   :  { %s35_s28 = sshll.u32 %s581_s27, 4  ;;  %s582_s9 = smov [#allocation8]   ;;  %s36_s28 = int_to_ptr.vmem [resolvable:$true] %s35_s28 }
   0x6   :  { %38 = dma.hbm_to_vmem [thread:$0]  %s34_s26, 128, %s36_s28, [#allocation6]  }
   0x7   :  { %s58_s10 = sshll.u32 %s582_s9, 4  ;;  %s22_s13 = sshll.u32 %s688_s0, 4  ;;  %s59_s10 = int_to_ptr.vmem [resolvable:$true] %s58_s10  ;;  %s23_s13 = int_to_ptr.hbm [resolvable:$true] %s22_s13 }
   0x8   :  { %s583_s1 = smov 128   ;;  %s584_s14 = smov 8  }
   0x9   :  { %64 = dma.hbm_to_vmem [thread:$0]  %s57_s8, 256, %s59_s10, [#allocation9], %s583_s1, %s583_s1, %s584_s14  }
   0xa   :  { %s43_s17 = sshll.u32 %s690_s2, 4  ;;  %s585_s18 = smov [#allocation2]   ;;  %s44_s17 = int_to_ptr.hbm [resolvable:$true] %s43_s17 }
   0xb   :  { %s24_s19 = sshll.u32 %s585_s18, 4  ;;  %s586_s3 = smov [#allocation7]   ;;  %s25_s19 = int_to_ptr.vmem [resolvable:$true] %s24_s19 }
   0xc   :  { %27 = dma.hbm_to_vmem [thread:$0]  %s23_s13, 128, %s25_s19, [#allocation3]  }
   0xd   :  { %s45_s20 = sshll.u32 %s586_s3, 4  ;;  %s69_s0 = sshll.u32 %s692_s4, 4  ;;  %s46_s20 = int_to_ptr.vmem [resolvable:$true] %s45_s20  ;;  %s70_s0 = int_to_ptr.hbm [resolvable:$true] %s69_s0 }
   0xe   :  { %51 = dma.hbm_to_vmem [thread:$0]  %s44_s17, 768, %s46_s20, [#allocation6], %s583_s1, %s583_s1, %s584_s14  }
   0xf   :  { %s587_s23 = smov [#allocation10]   ;;  %s82_s2 = sshll.u32 %s693_s5, 4  ;;  %s83_s2 = int_to_ptr.hbm [resolvable:$true] %s82_s2 }
  0x10   :  { %s71_s24 = sshll.u32 %s587_s23, 4  ;;  %s588_s27 = smov 256   ;;  %s72_s24 = int_to_ptr.vmem [resolvable:$true] %s71_s24 }
  0x11   :  { %s589_s28 = smov 16   ;;  %s590_s29 = smov [#allocation11]  }
  0x12   :  { %77 = dma.hbm_to_vmem [thread:$0]  %s70_s0, 2048, %s72_s24, [#allocation9], %s588_s27, %s588_s27, %s589_s28  }
  0x13   :  { %s84_s30 = sshll.u32 %s590_s29, 4  ;;  %s85_s30 = int_to_ptr.vmem [resolvable:$true] %s84_s30 }
  0x14   :  { %90 = dma.hbm_to_vmem [thread:$0]  %s83_s2, 4096, %s85_s30, [#allocation12], %s583_s1, %s583_s1, %s584_s14  }
  0x15   :  { %571 = dma.done.wait [#allocation3], 128  }
  0x16   :  { %572 = vsyncadd [#allocation3], 4294967168 }
  0x17   :  { %573 = dma.done.wait [#allocation6], 896  }
  0x18   :  { %574 = vsyncadd [#allocation6], 4294966400 }
  0x19   :  { %575 = dma.done.wait [#allocation9], 2304  }
  0x1a   :  { %576 = vsyncadd [#allocation9], 4294964992 }
  0x1b   :  { %577 = dma.done.wait [#allocation12], 4096  }
  0x1c   :  { %578 = vsyncadd [#allocation12], 4294963200  ;;  %v123_v0 = vld [vmem:[#allocation7 + $0x28] sm:$0xff]  ;;  %v122_v1 = vld [vmem:[#allocation7 + $0x20] sm:$0xff]  ;;  %vm127_vm0 = vcmask 130048   ;;  %vm151_vm1 = vcmask 392192   ;;  %v180_v10 = vlaneseq }
  0x1d   :  { %165 = vmatpush.msra.mxu2 %v123_v0  ;;  %v126_v2 = vld [vmem:[#allocation8 + $0x8] sm:$0xff]  ;;  %v125_v4 = vld [vmem:[#allocation8] sm:$0xff]  ;;  %v119_v7 = vld [vmem:[#allocation7 + $0x8] sm:$0xff]  ;;  %vm184_vm3 = vcmask 523264   ;;  %s591_s12 = smov [#allocation13]   ;;  %s371_s15 = sshll.u32 %s695_s7, 4  ;;  %s372_s15 = int_to_ptr.hbm [resolvable:$true] %s371_s15 }
  0x1e   :  { %v121_v3 = vld [vmem:[#allocation7 + $0x18] sm:$0xff]  ;;  %145 = vmatpush.msra.mxu3 %v126_v2  ;;  %v120_v6 = vld [vmem:[#allocation7 + $0x10] sm:$0xff]  ;;  %v118_v8 = vld [vmem:[#allocation7] sm:$0xff]  ;;  %v650_v12 = vand.u32 127, %v180_v10  ;;  %s369_s13 = sshll.u32 %s591_s12, 4  ;;  %s370_s13 = int_to_ptr.vmem [resolvable:$true] %s369_s13 }
  0x1f   :  { %v124_v5 = vld [vmem:[#allocation5] sm:$0xff]  ;;  %166 = vmatpush.msra.mxu2 %v122_v1  ;;  %v117_v9 = vld [vmem:[#allocation2] sm:$0xff]  ;;  %v232_v34 = vld [vmem:[#allocation10 + $0x60] sm:$0xff] }
  0x20   :  { %146 = vmatpush.msra.mxu3 %v125_v4  ;;  %v399_v13 = vld [vmem:[%s694_s6] ss:$0 sm:$0xff]  ;;  %vm182_vm2 = vcmp.lt.s32.totalorder %v650_v12, 32  ;;  %v235_v33 = vld [vmem:[#allocation10 + $0x78] sm:$0xff]  ;;  %v233_v35 = vld [vmem:[#allocation10 + $0x68] sm:$0xff] }
  0x21   :  { %167 = vmatpush.msra.mxu2 %v121_v3  ;;  %384 = vmatmul.msk.f32.vlgmr.msra.gmra.mxu3 %vm127_vm0, %v124_v5  ;;  %v234_v32 = vld [vmem:[#allocation10 + $0x70] sm:$0xff]  ;;  %v231_v37 = vld [vmem:[#allocation10 + $0x58] sm:$0xff]  ;;  %v228_v38 = vld [vmem:[#allocation10 + $0x40] sm:$0xff] }
  0x22   :  { %273 = vmatpush.msrb.mxu3 %v235_v33  ;;  %v230_v36 = vld [vmem:[#allocation10 + $0x50] sm:$0xff]  ;;  %v229_v39 = vld [vmem:[#allocation10 + $0x48] sm:$0xff]  ;;  %v227_v41 = vld [vmem:[#allocation10 + $0x38] sm:$0xff] }
  0x23   :  { %168 = vmatpush.msra.mxu2 %v120_v6  ;;  %v226_v40 = vld [vmem:[#allocation10 + $0x30] sm:$0xff]  ;;  %v224_v42 = vld [vmem:[#allocation10 + $0x20] sm:$0xff]  ;;  %v225_v43 = vld [vmem:[#allocation10 + $0x28] sm:$0xff] }
  0x24   :  { %274 = vmatpush.msrb.mxu3 %v233_v35  ;;  %v222_v44 = vld [vmem:[#allocation10 + $0x10] sm:$0xff]  ;;  %v223_v45 = vld [vmem:[#allocation10 + $0x18] sm:$0xff]  ;;  %v220_v46 = vld [vmem:[#allocation10] sm:$0xff] }
  0x25   :  { %169 = vmatpush.msra.mxu2 %v119_v7  ;;  %v221_v47 = vld [vmem:[#allocation10 + $0x8] sm:$0xff]  ;;  %v302_v49 = vld [vmem:[#allocation11 + $0x78] sm:$0xff]  ;;  %v301_v51 = vld [vmem:[#allocation11 + $0x70] sm:$0xff] }
  0x26   :  { %275 = vmatpush.msrb.mxu3 %v231_v37  ;;  %v318_v50 = vld [vmem:[#allocation11 + $0xf8] sm:$0xff]  ;;  %323 = vmatpush.msra.mxu0 %v302_v49  ;;  %v317_v52 = vld [vmem:[#allocation11 + $0xf0] sm:$0xff]  ;;  %v300_v53 = vld [vmem:[#allocation11 + $0x68] sm:$0xff] }
  0x27   :  { %170 = vmatpush.msra.mxu2 %v118_v8  ;;  %343 = vmatpush.msra.mxu1 %v318_v50  ;;  %v316_v54 = vld [vmem:[#allocation11 + $0xe8] sm:$0xff]  ;;  %v299_v55 = vld [vmem:[#allocation11 + $0x60] sm:$0xff]  ;;  %v298_v58 = vld [vmem:[#allocation11 + $0x58] sm:$0xff] }
  0x28   :  { %385 = vmatmul.msk.f32.vlgmr.msra.gmra.mxu2 %vm151_vm1, %v117_v9  ;;  %276 = vmatpush.msrb.mxu3 %v229_v39  ;;  %v315_v56 = vld [vmem:[#allocation11 + $0xe0] sm:$0xff]  ;;  %v314_v59 = vld [vmem:[#allocation11 + $0xd8] sm:$0xff]  ;;  %v297_v62 = vld [vmem:[#allocation11 + $0x50] sm:$0xff] }
  0x29   :  { %253 = vmatpush.msrb.mxu2 %v234_v32  ;;  %324 = vmatpush.msra.mxu0 %v301_v51  ;;  %v313_v63 = vld [vmem:[#allocation11 + $0xd0] sm:$0xff]  ;;  %v296_v2 = vld [vmem:[#allocation11 + $0x48] sm:$0xff]  ;;  %v295_v4 = vld [vmem:[#allocation11 + $0x40] sm:$0xff] }
  0x2a   :  { %277 = vmatpush.msrb.mxu3 %v227_v41  ;;  %344 = vmatpush.msra.mxu1 %v317_v52  ;;  %v312_v3 = vld [vmem:[#allocation11 + $0xc8] sm:$0xff]  ;;  %v311_v5 = vld [vmem:[#allocation11 + $0xc0] sm:$0xff]  ;;  %v294_v6 = vld [vmem:[#allocation11 + $0x38] sm:$0xff] }
  0x2b   :  { %254 = vmatpush.msrb.mxu2 %v232_v34  ;;  %325 = vmatpush.msra.mxu0 %v300_v53  ;;  %v310_v7 = vld [vmem:[#allocation11 + $0xb8] sm:$0xff]  ;;  %v293_v8 = vld [vmem:[#allocation11 + $0x30] sm:$0xff]  ;;  %v308_v12 = vld [vmem:[#allocation11 + $0xa8] sm:$0xff] }
  0x2c   :  { %278 = vmatpush.msrb.mxu3 %v225_v43  ;;  %345 = vmatpush.msra.mxu1 %v316_v54  ;;  %v309_v9 = vld [vmem:[#allocation11 + $0xb0] sm:$0xff] }
  0x2d   :  { %255 = vmatpush.msrb.mxu2 %v230_v36  ;;  %326 = vmatpush.msra.mxu0 %v299_v55  ;;  %v400_v39 = vld [vmem:[%s694_s6 + $0x3] ss:$0 sm:$0xff] }
  0x2e   :  { %279 = vmatpush.msrb.mxu3 %v223_v45  ;;  %346 = vmatpush.msra.mxu1 %v315_v56 }
  0x2f   :  { %256 = vmatpush.msrb.mxu2 %v228_v38  ;;  %327 = vmatpush.msra.mxu0 %v298_v58 }
  0x30   :  { %280 = vmatpush.msrb.mxu3 %v221_v47  ;;  %347 = vmatpush.msra.mxu1 %v314_v59 }
  0x31   :  { %257 = vmatpush.msrb.mxu2 %v226_v40  ;;  %328 = vmatpush.msra.mxu0 %v297_v62 }
  0x32   :  { %348 = vmatpush.msra.mxu1 %v313_v63 }
  0x33   :  { %258 = vmatpush.msrb.mxu2 %v224_v42  ;;  %329 = vmatpush.msra.mxu0 %v296_v2 }
  0x34   :  { %349 = vmatpush.msra.mxu1 %v312_v3 }
  0x35   :  { %259 = vmatpush.msrb.mxu2 %v222_v44  ;;  %330 = vmatpush.msra.mxu0 %v295_v4 }
  0x36   :  { %350 = vmatpush.msra.mxu1 %v311_v5 }
  0x37   :  { %260 = vmatpush.msrb.mxu2 %v220_v46  ;;  %331 = vmatpush.msra.mxu0 %v294_v6 }
  0x38   :  { %351 = vmatpush.msra.mxu1 %v310_v7 }
  0x39   :  { %332 = vmatpush.msra.mxu0 %v293_v8 }
  0x3a   :  { %352 = vmatpush.msra.mxu1 %v309_v9 }
  0x3c   :  { %353 = vmatpush.msra.mxu1 %v308_v12 }
  0xa4   :  { %v148_v11 = vpop.f32.mrf.mxu3 }
  0xab   :  { %v172_v14 = vpop.f32.mrf.mxu2 }
  0xac   :  { %v173_v15 = vadd.f32 %v172_v14, %v148_v11  ;;  %v292_v11 = vld [vmem:[#allocation11 + $0x28] sm:$0xff]  ;;  %v291_v14 = vld [vmem:[#allocation11 + $0x20] sm:$0xff] }
  0xad   :  { %333 = vmatpush.msra.mxu0 %v292_v11 }
  0xae   :  { %v179_v16 = vadd.f32 %v399_v13, %v173_v15  ;;  %v307_v15 = vld [vmem:[#allocation11 + $0xa0] sm:$0xff] }
  0xaf   :  { %334 = vmatpush.msra.mxu0 %v291_v14  ;;  %354 = vmatpush.msra.mxu1 %v307_v15 }
  0xb0   :  { %v183_v17 = vsel %vm182_vm2, %v179_v16, 0.0  ;;  %v189_v19 = vsel %vm182_vm2, 0.0, %v179_v16 }
  0xb1   :  { %v185_v18 = vsel %vm184_vm3, %v183_v17, 0.0  ;;  %v190_v20 = vsel %vm184_vm3, %v189_v19, 0.0  ;;  %v290_v17 = vld [vmem:[#allocation11 + $0x18] sm:$0xff] }
  0xb2   :  { %186 = vadd.xlane.f32.xlu0 %v185_v18  ;;  %v306_v18 = vld [vmem:[#allocation11 + $0x98] sm:$0xff]  ;;  %335 = vmatpush.msra.mxu0 %v290_v17 }
  0xb3   :  { %355 = vmatpush.msra.mxu1 %v306_v18 }
  0xba   :  { %191 = vadd.xlane.f32.xlu0 %v190_v20 }
 0x125   :  { %v187_v21 = vpop.xlane.xlu0 %186 }
 0x126   :  { %v188_v23 = vmul.f32 0.03125, %v187_v21 }
 0x12d   :  { %v192_v22 = vpop.xlane.xlu0 %191 }
 0x12e   :  { %v193_v24 = vmul.f32 0.03125, %v192_v22 }
 0x130   :  { %v194_v25 = vsel %vm182_vm2, %v188_v23, %v193_v24  ;;  %v289_v24 = vld [vmem:[#allocation11 + $0x10] sm:$0xff] }
 0x131   :  { %v664_v26 = vsub.f32 %v179_v16, %v194_v25  ;;  %v305_v25 = vld [vmem:[#allocation11 + $0x90] sm:$0xff]  ;;  %336 = vmatpush.msra.mxu0 %v289_v24 }
 0x132   :  { %356 = vmatpush.msra.mxu1 %v305_v25 }
 0x133   :  { %v196_v27 = vmul.f32 %v664_v26, %v664_v26 }
 0x135   :  { %v197_v28 = vsel %vm182_vm2, %v196_v27, 0.0  ;;  %v202_v30 = vsel %vm182_vm2, 0.0, %v196_v27  ;;  %v288_v27 = vld [vmem:[#allocation11 + $0x8] sm:$0xff] }
 0x136   :  { %v198_v29 = vsel %vm184_vm3, %v197_v28, 0.0  ;;  %v203_v31 = vsel %vm184_vm3, %v202_v30, 0.0  ;;  %v304_v28 = vld [vmem:[#allocation11 + $0x88] sm:$0xff]  ;;  %337 = vmatpush.msra.mxu0 %v288_v27  ;;  %v303_v30 = vld [vmem:[#allocation11 + $0x80] sm:$0xff] }
 0x137   :  { %199 = vadd.xlane.f32.xlu1 %v198_v29  ;;  %357 = vmatpush.msra.mxu1 %v304_v28  ;;  %v287_v29 = vld [vmem:[#allocation11] sm:$0xff] }
 0x138   :  { %338 = vmatpush.msra.mxu0 %v287_v29 }
 0x139   :  { %358 = vmatpush.msra.mxu1 %v303_v30 }
 0x13f   :  { %204 = vadd.xlane.f32.xlu1 %v203_v31 }
 0x1aa   :  { %v200_v48 = vpop.xlane.xlu1 %199 }
 0x1ab   :  { %v201_v60 = vmul.f32 0.03125, %v200_v48 }
 0x1b2   :  { %v205_v57 = vpop.xlane.xlu1 %204 }
 0x1b3   :  { %v206_v61 = vmul.f32 0.03125, %v205_v57 }
 0x1b5   :  { %v207_v0 = vsel %vm182_vm2, %v201_v60, %v206_v61 }
 0x1b6   :  { %v208_v1 = vadd.f32 1e-05, %v207_v0 }
 0x1b8   :  { %401 = vrsqrt.f32 %v208_v1  ;;  %vm215_vm5 = vweird.f32 %v208_v1 }
 0x1be   :  { %v402_v10 = vpop.eup %401 }
 0x1bf   :  { %v210_v13 = vmul.f32 %v402_v10, %v208_v1  ;;  %vm216_vm4 = vweird.f32 %v402_v10 }
 0x1c0   :  { %vm217_vm6 = vmor %vm215_vm5, %vm216_vm4 }
 0x1c1   :  { %v211_v16 = vmul.f32 %v402_v10, %v210_v13 }
 0x1c3   :  { %v212_v19 = vmul.f32 0.5, %v211_v16 }
 0x1c5   :  { %v213_v20 = vsub.f32 1.5, %v212_v19 }
 0x1c7   :  { %v214_v21 = vmul.f32 %v402_v10, %v213_v20 }
 0x1c9   :  { %v218_v22 = vsel %vm217_vm6, %v402_v10, %v214_v21 }
 0x1ca   :  { %v219_v23 = vmul.f32 %v218_v22, %v664_v26  ;;  %v236_v26 = vld [vmem:[%s694_s6 + $0x1] sm:$0x3] }
 0x1cb   :  { %v238_v31 = vperm.slane %v236_v26, 0  ;;  %v239_v32 = vperm.slane %v236_v26, 1 }
 0x1cc   :  { %386 = vmatmul.msk.f32.vlgmr.msrb.gmra.mxu2 %vm184_vm3, %v219_v23  ;;  %387 = vmatmul.msk.f32.vlgmr.msrb.gmra.mxu3 %vm184_vm3, %v219_v23 }
 0x24f   :  { %v262_v33 = vpop.f32.mrf.mxu2  ;;  %v282_v34 = vpop.f32.mrf.mxu3 }
 0x250   :  { %v263_v35 = vadd.f32 %v262_v33, %v238_v31  ;;  %v283_v36 = vadd.f32 %v282_v34, %v239_v32 }
 0x252   :  { %v285_v37 = vmax.f32 %v263_v35, 0.0  ;;  %v286_v38 = vmax.f32 %v283_v36, 0.0 }
 0x254   :  { %339 = vmatmul.f32.vlgmr.msra.gmra.mxu0 %v285_v37  ;;  %359 = vmatmul.f32.vlgmr.msra.gmra.mxu1 %v286_v38 }
 0x2d1   :  { %v340_v40 = vpop.f32.mrf.mxu0  ;;  %v360_v42 = vpop.f32.mrf.mxu1 }
 0x2d2   :  { %v341_v41 = vadd.f32 %v400_v39, %v340_v40 }
 0x2d4   :  { %v361_v43 = vadd.f32 %v360_v42, %v341_v41 }
 0x2d6   :  { %363 = vst [vmem:[#allocation13] sm:$0xff] %v361_v43 }
 0x2d7   :  { %374 = dma.vmem_to_hbm [thread:$0]  %s370_s13, 128, %s372_s15, [#allocation4]  }
 0x2d8   :  { %579 = dma.done.wait [#allocation4], 128  }
 0x2d9   :  { %580 = vsyncadd [#allocation4], 4294967168 }
 0x2da   :  { %379 = vsyncpa [#allocation3], 1 }
 0x2db   :  { %380 = vsyncpa [#allocation6], 1 }
 0x2dc   :  { %381 = vsyncpa [#allocation9], 1 }
 0x2dd   :  { %382 = vsyncpa [#allocation12], 1 }
 0x2de   :  { %383 = vsyncpa [#allocation4], 1 }

</bundles_post_ra>
